<compile_context>
chip_gen: v6e
topology: v6e:2x2x1
jax: 0.10.0
libtpu: 0.0.40
codegen_flags: <defaults>
</compile_context>

<pallas_src>
import functools

import jax
import jax.numpy as jnp
from jax import lax
from jax.experimental import pallas as pl
from jax.experimental.pallas import tpu as pltpu

EPS = 1e-5  # nn.LayerNorm default eps


# ------------------------------ kernel ------------------------------------- #

def _fused_layer_kernel(x_ref, g1_ref, b1_ref, wd_ref, bd_ref,
                        win_ref, bin_ref, wo_ref, bo_ref, g2_ref, b2_ref,
                        o_ref, *, num_heads):
    """One batch block: LN1 -> Linear+ReLU -> MHA -> residual -> LN2.

    All intermediates (qkv, per-head scores, head outputs) stay in VMEM/vregs;
    nothing round-trips through HBM between stages.
    """
    nb, L, E = x_ref.shape
    Dh = E // num_heads
    R = nb * L                                      # matmul M-dim

    x = x_ref[...].reshape(R, E)                    # (R, E) f32

    # ---- LayerNorm 1 (f32) -------------------------------------------------
    mu = jnp.mean(x, axis=-1, keepdims=True)
    var = jnp.mean((x - mu) ** 2, axis=-1, keepdims=True)
    xn = (x - mu) * lax.rsqrt(var + EPS)
    xn = xn * g1_ref[...] + b1_ref[...]

    # ---- dense: Linear + ReLU (bf16 MXU operands, f32 accumulate) ----------
    xd = jnp.dot(xn.astype(jnp.bfloat16), wd_ref[...],
                 preferred_element_type=jnp.float32) + bd_ref[...]
    xd = jnp.maximum(xd, 0.0)

    # ---- fused QKV in-projection (Q columns pre-scaled by 1/sqrt(Dh)) ------
    qkv = jnp.dot(xd.astype(jnp.bfloat16), win_ref[...],
                  preferred_element_type=jnp.float32) + bin_ref[...]
    qkv = qkv.reshape(nb, L, 3 * E)
    q = qkv[:, :, :E]
    k = qkv[:, :, E:2 * E]
    v = qkv[:, :, 2 * E:]

    # ---- per-head attention, accumulated straight into the out-projection --
    # attn @ Wo == sum_h  attn_h @ Wo[h*Dh:(h+1)*Dh, :]  -> no concatenate,
    # no H live head outputs, one accumulator.
    acc = jnp.zeros((R, E), jnp.float32)
    for h in range(num_heads):                      # static python loop
        sl = slice(h * Dh, (h + 1) * Dh)
        qh = q[:, :, sl].astype(jnp.bfloat16)       # (nb, L, Dh)
        kh = k[:, :, sl].astype(jnp.bfloat16)
        vh = v[:, :, sl].astype(jnp.bfloat16)
        # batched over nb; contract last dims -> no K transpose materialized
        s = jnp.einsum('bqd,bkd->bqk', qh, kh,
                       preferred_element_type=jnp.float32)          # (nb,L,L)
        s = s - jnp.max(s, axis=-1, keepdims=True)
        p = jnp.exp(s)                                               # f32
        denom = jnp.sum(p, axis=-1, keepdims=True)
        oh = jnp.einsum('bqk,bkd->bqd', p.astype(jnp.bfloat16), vh,
                        preferred_element_type=jnp.float32)          # (nb,L,Dh)
        # normalize AFTER the PV matmul (L*Dh mults vs L*L divides); the
        # reciprocal runs on the EUP slot.
        oh = oh * pl.reciprocal(denom, approx=True)
        acc = acc + jnp.dot(oh.reshape(R, Dh).astype(jnp.bfloat16),
                            wo_ref[sl, :],
                            preferred_element_type=jnp.float32)      # (R, E)

    # ---- residual + LayerNorm 2 --------------------------------------------
    y = x + acc + bo_ref[...]
    mu2 = jnp.mean(y, axis=-1, keepdims=True)
    var2 = jnp.mean((y - mu2) ** 2, axis=-1, keepdims=True)
    yn = (y - mu2) * lax.rsqrt(var2 + EPS)
    o_ref[...] = (yn * g2_ref[...] + b2_ref[...]).reshape(nb, L, E)


# ------------------------------ wrapper ------------------------------------ #

def _vmem_limit_bytes():
    """~75% of physical VMEM (48 MiB on v7x, 96 MiB cap on v5e/v6e)."""
    try:
        cap = pltpu.get_tpu_info().vmem_capacity_bytes
    except Exception:
        cap = 128 * 1024 * 1024
    return int(min(cap * 3 // 4, 96 * 1024 * 1024))


def _pick_block_batch(N, L, E):
    """Largest divisor of N whose (Nb, L, E) f32 slab stays within ~4 MiB."""
    per_elem = max(L * E * 4, 1)
    nb = min(N, max(1, (4 * 1024 * 1024) // per_elem))
    while N % nb:
        nb -= 1
    return nb


def prepare_params(params, num_heads):
    """One-time parameter transform: fold 1/sqrt(Dh) into the Q columns of the
    in-projection and cast matmul weights to bf16 (halves weight HBM traffic).
    Biases and LayerNorm params stay f32."""
    E = params["wd_t"].shape[0]
    Dh = E // num_heads
    scale = 1.0 / (Dh ** 0.5)
    win_t = params["win_t"].at[:, :E].multiply(scale)
    bin_ = params["bin"].at[:, :E].multiply(scale)
    prep = dict(params)
    prep["wd_t"] = params["wd_t"].astype(jnp.bfloat16)
    prep["win_t"] = win_t.astype(jnp.bfloat16)
    prep["bin"] = bin_
    prep["wo_t"] = params["wo_t"].astype(jnp.bfloat16)
    return prep


def transformer_encoder_layer_batch_first(xb, prep, num_heads, block_batch=None):
    """Batch-first (N, L, E) entry point — no layout conversions."""
    N, L, E = xb.shape
    assert E % num_heads == 0
    nb = block_batch if block_batch is not None else _pick_block_batch(N, L, E)
    grid = (N // nb,)
    # NOTE(v7x): if N is large, pick nb = N // (2*k) so the parallel grid axis
    # has >= 2 steps and both TensorCores stay loaded.

    def full(shape):                               # weight: VMEM-resident
        return pl.BlockSpec(shape, lambda n: (0,) * len(shape))

    flops = (2 * N * L * E * E                     # dense
             + 2 * N * L * E * 3 * E               # qkv in-projection
             + 4 * N * L * L * E                   # QK^T + PV
             + 2 * N * L * E * E)                  # out-projection
    bytes_accessed = (2 * N * L * E * 4            # x in + out (f32)
                      + 5 * E * E * 2              # bf16 weights
                      + 11 * E * 4)                # biases / LN params
    cost = pl.CostEstimate(
        flops=flops,
        transcendentals=N * num_heads * L * L + 4 * N * L,
        bytes_accessed=bytes_accessed)

    return pl.pallas_call(
        functools.partial(_fused_layer_kernel, num_heads=num_heads),
        out_shape=jax.ShapeDtypeStruct((N, L, E), jnp.float32),
        grid=grid,
        in_specs=[
            pl.BlockSpec((nb, L, E), lambda n: (n, 0, 0)),  # x, per batch block
            full((1, E)), full((1, E)),                     # LN1 gamma/beta
            full((E, E)), full((1, E)),                     # dense W^T, b
            full((E, 3 * E)), full((1, 3 * E)),             # in-proj W^T, b
            full((E, E)), full((1, E)),                     # out-proj W^T, b
            full((1, E)), full((1, E)),                     # LN2 gamma/beta
        ],
        out_specs=pl.BlockSpec((nb, L, E), lambda n: (n, 0, 0)),
        compiler_params=pltpu.CompilerParams(
            dimension_semantics=("parallel",),     # shard batch blocks across TCs
            vmem_limit_bytes=_vmem_limit_bytes(),
        ),
        cost_estimate=cost,
    )(xb, prep["g1"], prep["b1"], prep["wd_t"], prep["bd"],
      prep["win_t"], prep["bin"], prep["wo_t"], prep["bo"],
      prep["g2"], prep["b2"])


def transformer_encoder_layer(x, prep, num_heads):
    """PyTorch-layout (L, N, E) wrapper. The layout conversion happens once at
    the model boundary; stacked layers should call the batch-first entry
    directly so it isn't paid per layer."""
    xb = jnp.transpose(x, (1, 0, 2))               # (N, L, E)
    yb = transformer_encoder_layer_batch_first(xb, prep, num_heads)
    return jnp.transpose(yb, (1, 0, 2))            # back to (L, N, E)


# --------------------------- pure-JAX reference ----------------------------- #

def ref_forward(x, params, num_heads):
    L, N, E = x.shape
    H, Dh = num_heads, E // num_heads

    def ln(y, g, b):
        mu = y.mean(-1, keepdims=True)
        var = ((y - mu) ** 2).mean(-1, keepdims=True)
        return (y - mu) / jnp.sqrt(var + EPS) * g + b

    xn = ln(x, params["g1"][0], params["b1"][0])
    xd = jnp.maximum(xn @ params["wd_t"] + params["bd"][0], 0.0)
    qkv = xd @ params["win_t"] + params["bin"][0]
    q, k, v = qkv[..., :E], qkv[..., E:2 * E], qkv[..., 2 * E:]

    def heads(t):  # (L, N, E) -> (N, H, L, Dh)
        return t.reshape(L, N, H, Dh).transpose(1, 2, 0, 3)

    qh, kh, vh = heads(q), heads(k), heads(v)
    s = jnp.einsum('nhld,nhmd->nhlm', qh / jnp.sqrt(Dh), kh)
    p = jax.nn.softmax(s, axis=-1)
    a = jnp.einsum('nhlm,nhmd->nhld', p, vh)
    a = a.transpose(2, 0, 1, 3).reshape(L, N, E)
    attn_out = a @ params["wo_t"] + params["bo"][0]
    return ln(x + attn_out, params["g2"][0], params["b2"][0])


# --------------------------------- main ------------------------------------- #

if __name__ == "__main__":
    L, N, E, H = 8, 2, 32, 4   # seq, batch, embed_dim, num_heads

    key = jax.random.PRNGKey(0)
    keys = jax.random.split(key, 8)

    params = {
        # LayerNorm params (PyTorch init: weight=1, bias=0)
        "g1": jnp.ones((1, E), jnp.float32),
        "b1": jnp.zeros((1, E), jnp.float32),
        "g2": jnp.ones((1, E), jnp.float32),
        "b2": jnp.zeros((1, E), jnp.float32),
        # dense = Linear(E, E); stored transposed (E, E): y = x @ W^T
        "wd_t": 0.1 * jax.random.normal(keys[0], (E, E), jnp.float32),
        "bd": 0.1 * jax.random.normal(keys[1], (1, E), jnp.float32),
        # MultiheadAttention in_proj_weight (3E, E) stored transposed (E, 3E)
        "win_t": 0.1 * jax.random.normal(keys[2], (E, 3 * E), jnp.float32),
        "bin": 0.1 * jax.random.normal(keys[3], (1, 3 * E), jnp.float32),
        # out_proj Linear(E, E), stored transposed
        "wo_t": 0.1 * jax.random.normal(keys[4], (E, E), jnp.float32),
        "bo": 0.1 * jax.random.normal(keys[5], (1, E), jnp.float32),
    }

    x = jax.random.normal(keys[6], (L, N, E), jnp.float32)

    prep = prepare_params(params, num_heads=H)     # one-time weight transform
    out = transformer_encoder_layer(x, prep, num_heads=H)
    out = jax.block_until_ready(out)

    ref = ref_forward(x, params, num_heads=H)
    assert out.shape == (L, N, E)
    # Tolerance loosened vs the f32 reference: kernel uses bf16 MXU operands
    # and pl.reciprocal(approx=True) for the softmax denominator.
    assert jnp.allclose(out, ref, atol=5e-2, rtol=5e-2), "mismatch vs JAX reference"

    print("KERNEL_OK")
</pallas_src>

<mosaic_0001>
module attributes {stable_mosaic.version = 11 : i64} {
  func.func @_fused_layer_kernel(%arg0: i32, %arg1: memref<2x8x32xf32, #tpu.memory_space<vmem>>, %arg2: memref<1x32xf32, #tpu.memory_space<vmem>>, %arg3: memref<1x32xf32, #tpu.memory_space<vmem>>, %arg4: memref<32x32xbf16, #tpu.memory_space<vmem>>, %arg5: memref<1x32xf32, #tpu.memory_space<vmem>>, %arg6: memref<32x96xbf16, #tpu.memory_space<vmem>>, %arg7: memref<1x96xf32, #tpu.memory_space<vmem>>, %arg8: memref<32x32xbf16, #tpu.memory_space<vmem>>, %arg9: memref<1x32xf32, #tpu.memory_space<vmem>>, %arg10: memref<1x32xf32, #tpu.memory_space<vmem>>, %arg11: memref<1x32xf32, #tpu.memory_space<vmem>>, %arg12: memref<2x8x32xf32, #tpu.memory_space<vmem>>) attributes {dimension_semantics = [#tpu.dimension_semantics<parallel>], iteration_bounds = array<i64: 1>, scalar_prefetch = 0 : i64, scratch_operands = 0 : i64, tpu.core_type = #tpu.core_type<tc>, window_params = [{transform_indices = @transform_0, window_bounds = array<i64: 2, 8, 32>}, {pipeline_mode = #tpu.pipeline_mode<synchronous>, transform_indices = @transform_1, window_bounds = array<i64: 1, 32>}, {pipeline_mode = #tpu.pipeline_mode<synchronous>, transform_indices = @transform_2, window_bounds = array<i64: 1, 32>}, {pipeline_mode = #tpu.pipeline_mode<synchronous>, transform_indices = @transform_3, window_bounds = array<i64: 32, 32>}, {pipeline_mode = #tpu.pipeline_mode<synchronous>, transform_indices = @transform_4, window_bounds = array<i64: 1, 32>}, {pipeline_mode = #tpu.pipeline_mode<synchronous>, transform_indices = @transform_5, window_bounds = array<i64: 32, 96>}, {pipeline_mode = #tpu.pipeline_mode<synchronous>, transform_indices = @transform_6, window_bounds = array<i64: 1, 96>}, {pipeline_mode = #tpu.pipeline_mode<synchronous>, transform_indices = @transform_7, window_bounds = array<i64: 32, 32>}, {pipeline_mode = #tpu.pipeline_mode<synchronous>, transform_indices = @transform_8, window_bounds = array<i64: 1, 32>}, {pipeline_mode = #tpu.pipeline_mode<synchronous>, transform_indices = @transform_9, window_bounds = array<i64: 1, 32>}, {pipeline_mode = #tpu.pipeline_mode<synchronous>, transform_indices = @transform_10, window_bounds = array<i64: 1, 32>}, {transform_indices = @transform_11, window_bounds = array<i64: 2, 8, 32>}]} {
    %c0 = arith.constant 0 : index
    %c0_0 = arith.constant 0 : index
    %c0_1 = arith.constant 0 : index
    %0 = vector.load %arg1[%c0, %c0_0, %c0_1] : memref<2x8x32xf32, #tpu.memory_space<vmem>>, vector<2x8x32xf32>
    %1 = vector.shape_cast %0 : vector<2x8x32xf32> to vector<16x32xf32>
    %cst = arith.constant dense<0.000000e+00> : vector<16xf32>
    %2 = vector.multi_reduction <add>, %1, %cst [1] : vector<16x32xf32> to vector<16xf32>
    %3 = vector.shape_cast %2 : vector<16xf32> to vector<16x1xf32>
    %cst_2 = arith.constant 3.200000e+01 : f32
    %4 = vector.broadcast %cst_2 : f32 to vector<16x1xf32>
    %5 = arith.divf %3, %4 : vector<16x1xf32>
    %6 = vector.broadcast %5 : vector<16x1xf32> to vector<16x32xf32>
    %7 = arith.subf %1, %6 : vector<16x32xf32>
    %8 = arith.mulf %7, %7 : vector<16x32xf32>
    %cst_3 = arith.constant dense<0.000000e+00> : vector<16xf32>
    %9 = vector.multi_reduction <add>, %8, %cst_3 [1] : vector<16x32xf32> to vector<16xf32>
    %10 = vector.shape_cast %9 : vector<16xf32> to vector<16x1xf32>
    %cst_4 = arith.constant 3.200000e+01 : f32
    %11 = vector.broadcast %cst_4 : f32 to vector<16x1xf32>
    %12 = arith.divf %10, %11 : vector<16x1xf32>
    %13 = vector.broadcast %5 : vector<16x1xf32> to vector<16x32xf32>
    %14 = arith.subf %1, %13 : vector<16x32xf32>
    %cst_5 = arith.constant 9.99999974E-6 : f32
    %15 = vector.broadcast %cst_5 : f32 to vector<16x1xf32>
    %16 = arith.addf %12, %15 : vector<16x1xf32>
    %17 = math.rsqrt %16 : vector<16x1xf32>
    %18 = vector.broadcast %17 : vector<16x1xf32> to vector<16x32xf32>
    %19 = arith.mulf %14, %18 : vector<16x32xf32>
    %c0_6 = arith.constant 0 : index
    %c0_7 = arith.constant 0 : index
    %20 = vector.load %arg2[%c0_6, %c0_7] : memref<1x32xf32, #tpu.memory_space<vmem>>, vector<1x32xf32>
    %21 = vector.broadcast %20 : vector<1x32xf32> to vector<16x32xf32>
    %22 = arith.mulf %19, %21 : vector<16x32xf32>
    %c0_8 = arith.constant 0 : index
    %c0_9 = arith.constant 0 : index
    %23 = vector.load %arg3[%c0_8, %c0_9] : memref<1x32xf32, #tpu.memory_space<vmem>>, vector<1x32xf32>
    %24 = vector.broadcast %23 : vector<1x32xf32> to vector<16x32xf32>
    %25 = arith.addf %22, %24 : vector<16x32xf32>
    %26 = arith.truncf %25 : vector<16x32xf32> to vector<16x32xbf16>
    %c0_10 = arith.constant 0 : index
    %c0_11 = arith.constant 0 : index
    %27 = vector.load %arg4[%c0_10, %c0_11] : memref<32x32xbf16, #tpu.memory_space<vmem>>, vector<32x32xbf16>
    %cst_12 = arith.constant dense<0.000000e+00> : vector<16x32xf32>
    %28 = tpu.matmul %26, %27, %cst_12 {dimension_numbers = #tpu.dot_dimension_numbers<[1], [0], [0], [1], [0, 0, 1, 1], [], []>} : vector<16x32xbf16>, vector<32x32xbf16>, vector<16x32xf32> -> vector<16x32xf32>
    %c0_13 = arith.constant 0 : index
    %c0_14 = arith.constant 0 : index
    %29 = vector.load %arg5[%c0_13, %c0_14] : memref<1x32xf32, #tpu.memory_space<vmem>>, vector<1x32xf32>
    %30 = vector.broadcast %29 : vector<1x32xf32> to vector<16x32xf32>
    %31 = arith.addf %28, %30 : vector<16x32xf32>
    %cst_15 = arith.constant 0.000000e+00 : f32
    %32 = vector.broadcast %cst_15 : f32 to vector<16x32xf32>
    %33 = arith.maximumf %31, %32 : vector<16x32xf32>
    %34 = arith.truncf %33 : vector<16x32xf32> to vector<16x32xbf16>
    %c0_16 = arith.constant 0 : index
    %c0_17 = arith.constant 0 : index
    %35 = vector.load %arg6[%c0_16, %c0_17] : memref<32x96xbf16, #tpu.memory_space<vmem>>, vector<32x96xbf16>
    %cst_18 = arith.constant dense<0.000000e+00> : vector<16x96xf32>
    %36 = tpu.matmul %34, %35, %cst_18 {dimension_numbers = #tpu.dot_dimension_numbers<[1], [0], [0], [1], [0, 0, 1, 1], [], []>} : vector<16x32xbf16>, vector<32x96xbf16>, vector<16x96xf32> -> vector<16x96xf32>
    %c0_19 = arith.constant 0 : index
    %c0_20 = arith.constant 0 : index
    %37 = vector.load %arg7[%c0_19, %c0_20] : memref<1x96xf32, #tpu.memory_space<vmem>>, vector<1x96xf32>
    %38 = vector.broadcast %37 : vector<1x96xf32> to vector<16x96xf32>
    %39 = arith.addf %36, %38 : vector<16x96xf32>
    %40 = vector.shape_cast %39 : vector<16x96xf32> to vector<2x8x96xf32>
    %41 = vector.extract_strided_slice %40 {offsets = [0, 0, 0], sizes = [2, 8, 32], strides = [1, 1, 1]} : vector<2x8x96xf32> to vector<2x8x32xf32>
    %42 = vector.extract_strided_slice %40 {offsets = [0, 0, 32], sizes = [2, 8, 32], strides = [1, 1, 1]} : vector<2x8x96xf32> to vector<2x8x32xf32>
    %43 = vector.extract_strided_slice %40 {offsets = [0, 0, 64], sizes = [2, 8, 32], strides = [1, 1, 1]} : vector<2x8x96xf32> to vector<2x8x32xf32>
    %cst_21 = arith.constant 0.000000e+00 : f32
    %44 = vector.broadcast %cst_21 : f32 to vector<16x32xf32>
    %45 = vector.extract_strided_slice %41 {offsets = [0, 0, 0], sizes = [2, 8, 8], strides = [1, 1, 1]} : vector<2x8x32xf32> to vector<2x8x8xf32>
    %46 = arith.truncf %45 : vector<2x8x8xf32> to vector<2x8x8xbf16>
    %47 = vector.extract_strided_slice %42 {offsets = [0, 0, 0], sizes = [2, 8, 8], strides = [1, 1, 1]} : vector<2x8x32xf32> to vector<2x8x8xf32>
    %48 = arith.truncf %47 : vector<2x8x8xf32> to vector<2x8x8xbf16>
    %49 = vector.extract_strided_slice %43 {offsets = [0, 0, 0], sizes = [2, 8, 8], strides = [1, 1, 1]} : vector<2x8x32xf32> to vector<2x8x8xf32>
    %50 = arith.truncf %49 : vector<2x8x8xf32> to vector<2x8x8xbf16>
    "tpu.trace_start"() <{level = 10 : i32, message = "bqd,bkd->bqk"}> : () -> ()
    %cst_22 = arith.constant dense<0.000000e+00> : vector<2x8x8xf32>
    %51 = tpu.matmul %46, %48, %cst_22 {dimension_numbers = #tpu.dot_dimension_numbers<[2], [2], [1], [1], [0, 0, 0, 1, 1, 1], [0], [0]>} : vector<2x8x8xbf16>, vector<2x8x8xbf16>, vector<2x8x8xf32> -> vector<2x8x8xf32>
    "tpu.trace_stop"() : () -> ()
    %cst_23 = arith.constant dense<0xFF800000> : vector<2x8xf32>
    %52 = vector.multi_reduction <maximumf>, %51, %cst_23 [2] : vector<2x8x8xf32> to vector<2x8xf32>
    %53 = vector.shape_cast %52 : vector<2x8xf32> to vector<2x8x1xf32>
    %54 = vector.broadcast %53 : vector<2x8x1xf32> to vector<2x8x8xf32>
    %55 = arith.subf %51, %54 : vector<2x8x8xf32>
    %56 = math.exp %55 : vector<2x8x8xf32>
    %cst_24 = arith.constant dense<0.000000e+00> : vector<2x8xf32>
    %57 = vector.multi_reduction <add>, %56, %cst_24 [2] : vector<2x8x8xf32> to vector<2x8xf32>
    %58 = vector.shape_cast %57 : vector<2x8xf32> to vector<2x8x1xf32>
    %59 = arith.truncf %56 : vector<2x8x8xf32> to vector<2x8x8xbf16>
    "tpu.trace_start"() <{level = 10 : i32, message = "bqk,bkd->bqd"}> : () -> ()
    %cst_25 = arith.constant dense<0.000000e+00> : vector<2x8x8xf32>
    %60 = tpu.matmul %59, %50, %cst_25 {dimension_numbers = #tpu.dot_dimension_numbers<[2], [1], [1], [2], [0, 0, 0, 1, 1, 2], [0], [0]>} : vector<2x8x8xbf16>, vector<2x8x8xbf16>, vector<2x8x8xf32> -> vector<2x8x8xf32>
    "tpu.trace_stop"() : () -> ()
    %61 = tpu.reciprocal %58 {approx = true} : vector<2x8x1xf32> -> vector<2x8x1xf32>
    %62 = vector.broadcast %61 : vector<2x8x1xf32> to vector<2x8x8xf32>
    %63 = arith.mulf %60, %62 : vector<2x8x8xf32>
    %64 = vector.shape_cast %63 : vector<2x8x8xf32> to vector<16x8xf32>
    %65 = arith.truncf %64 : vector<16x8xf32> to vector<16x8xbf16>
    %c0_26 = arith.constant 0 : index
    %c0_27 = arith.constant 0 : index
    %66 = vector.load %arg8[%c0_26, %c0_27] : memref<32x32xbf16, #tpu.memory_space<vmem>>, vector<8x32xbf16>
    %cst_28 = arith.constant dense<0.000000e+00> : vector<16x32xf32>
    %67 = tpu.matmul %65, %66, %cst_28 {dimension_numbers = #tpu.dot_dimension_numbers<[1], [0], [0], [1], [0, 0, 1, 1], [], []>} : vector<16x8xbf16>, vector<8x32xbf16>, vector<16x32xf32> -> vector<16x32xf32>
    %68 = arith.addf %44, %67 : vector<16x32xf32>
    %69 = vector.extract_strided_slice %41 {offsets = [0, 0, 8], sizes = [2, 8, 8], strides = [1, 1, 1]} : vector<2x8x32xf32> to vector<2x8x8xf32>
    %70 = arith.truncf %69 : vector<2x8x8xf32> to vector<2x8x8xbf16>
    %71 = vector.extract_strided_slice %42 {offsets = [0, 0, 8], sizes = [2, 8, 8], strides = [1, 1, 1]} : vector<2x8x32xf32> to vector<2x8x8xf32>
    %72 = arith.truncf %71 : vector<2x8x8xf32> to vector<2x8x8xbf16>
    %73 = vector.extract_strided_slice %43 {offsets = [0, 0, 8], sizes = [2, 8, 8], strides = [1, 1, 1]} : vector<2x8x32xf32> to vector<2x8x8xf32>
    %74 = arith.truncf %73 : vector<2x8x8xf32> to vector<2x8x8xbf16>
    "tpu.trace_start"() <{level = 10 : i32, message = "bqd,bkd->bqk"}> : () -> ()
    %cst_29 = arith.constant dense<0.000000e+00> : vector<2x8x8xf32>
    %75 = tpu.matmul %70, %72, %cst_29 {dimension_numbers = #tpu.dot_dimension_numbers<[2], [2], [1], [1], [0, 0, 0, 1, 1, 1], [0], [0]>} : vector<2x8x8xbf16>, vector<2x8x8xbf16>, vector<2x8x8xf32> -> vector<2x8x8xf32>
    "tpu.trace_stop"() : () -> ()
    %cst_30 = arith.constant dense<0xFF800000> : vector<2x8xf32>
    %76 = vector.multi_reduction <maximumf>, %75, %cst_30 [2] : vector<2x8x8xf32> to vector<2x8xf32>
    %77 = vector.shape_cast %76 : vector<2x8xf32> to vector<2x8x1xf32>
    %78 = vector.broadcast %77 : vector<2x8x1xf32> to vector<2x8x8xf32>
    %79 = arith.subf %75, %78 : vector<2x8x8xf32>
    %80 = math.exp %79 : vector<2x8x8xf32>
    %cst_31 = arith.constant dense<0.000000e+00> : vector<2x8xf32>
    %81 = vector.multi_reduction <add>, %80, %cst_31 [2] : vector<2x8x8xf32> to vector<2x8xf32>
    %82 = vector.shape_cast %81 : vector<2x8xf32> to vector<2x8x1xf32>
    %83 = arith.truncf %80 : vector<2x8x8xf32> to vector<2x8x8xbf16>
    "tpu.trace_start"() <{level = 10 : i32, message = "bqk,bkd->bqd"}> : () -> ()
    %cst_32 = arith.constant dense<0.000000e+00> : vector<2x8x8xf32>
    %84 = tpu.matmul %83, %74, %cst_32 {dimension_numbers = #tpu.dot_dimension_numbers<[2], [1], [1], [2], [0, 0, 0, 1, 1, 2], [0], [0]>} : vector<2x8x8xbf16>, vector<2x8x8xbf16>, vector<2x8x8xf32> -> vector<2x8x8xf32>
    "tpu.trace_stop"() : () -> ()
    %85 = tpu.reciprocal %82 {approx = true} : vector<2x8x1xf32> -> vector<2x8x1xf32>
    %86 = vector.broadcast %85 : vector<2x8x1xf32> to vector<2x8x8xf32>
    %87 = arith.mulf %84, %86 : vector<2x8x8xf32>
    %88 = vector.shape_cast %87 : vector<2x8x8xf32> to vector<16x8xf32>
    %89 = arith.truncf %88 : vector<16x8xf32> to vector<16x8xbf16>
    %c8 = arith.constant 8 : index
    %c0_33 = arith.constant 0 : index
    %90 = vector.load %arg8[%c8, %c0_33] : memref<32x32xbf16, #tpu.memory_space<vmem>>, vector<8x32xbf16>
    %cst_34 = arith.constant dense<0.000000e+00> : vector<16x32xf32>
    %91 = tpu.matmul %89, %90, %cst_34 {dimension_numbers = #tpu.dot_dimension_numbers<[1], [0], [0], [1], [0, 0, 1, 1], [], []>} : vector<16x8xbf16>, vector<8x32xbf16>, vector<16x32xf32> -> vector<16x32xf32>
    %92 = arith.addf %68, %91 : vector<16x32xf32>
    %93 = vector.extract_strided_slice %41 {offsets = [0, 0, 16], sizes = [2, 8, 8], strides = [1, 1, 1]} : vector<2x8x32xf32> to vector<2x8x8xf32>
    %94 = arith.truncf %93 : vector<2x8x8xf32> to vector<2x8x8xbf16>
    %95 = vector.extract_strided_slice %42 {offsets = [0, 0, 16], sizes = [2, 8, 8], strides = [1, 1, 1]} : vector<2x8x32xf32> to vector<2x8x8xf32>
    %96 = arith.truncf %95 : vector<2x8x8xf32> to vector<2x8x8xbf16>
    %97 = vector.extract_strided_slice %43 {offsets = [0, 0, 16], sizes = [2, 8, 8], strides = [1, 1, 1]} : vector<2x8x32xf32> to vector<2x8x8xf32>
    %98 = arith.truncf %97 : vector<2x8x8xf32> to vector<2x8x8xbf16>
    "tpu.trace_start"() <{level = 10 : i32, message = "bqd,bkd->bqk"}> : () -> ()
    %cst_35 = arith.constant dense<0.000000e+00> : vector<2x8x8xf32>
    %99 = tpu.matmul %94, %96, %cst_35 {dimension_numbers = #tpu.dot_dimension_numbers<[2], [2], [1], [1], [0, 0, 0, 1, 1, 1], [0], [0]>} : vector<2x8x8xbf16>, vector<2x8x8xbf16>, vector<2x8x8xf32> -> vector<2x8x8xf32>
    "tpu.trace_stop"() : () -> ()
    %cst_36 = arith.constant dense<0xFF800000> : vector<2x8xf32>
    %100 = vector.multi_reduction <maximumf>, %99, %cst_36 [2] : vector<2x8x8xf32> to vector<2x8xf32>
    %101 = vector.shape_cast %100 : vector<2x8xf32> to vector<2x8x1xf32>
    %102 = vector.broadcast %101 : vector<2x8x1xf32> to vector<2x8x8xf32>
    %103 = arith.subf %99, %102 : vector<2x8x8xf32>
    %104 = math.exp %103 : vector<2x8x8xf32>
    %cst_37 = arith.constant dense<0.000000e+00> : vector<2x8xf32>
    %105 = vector.multi_reduction <add>, %104, %cst_37 [2] : vector<2x8x8xf32> to vector<2x8xf32>
    %106 = vector.shape_cast %105 : vector<2x8xf32> to vector<2x8x1xf32>
    %107 = arith.truncf %104 : vector<2x8x8xf32> to vector<2x8x8xbf16>
    "tpu.trace_start"() <{level = 10 : i32, message = "bqk,bkd->bqd"}> : () -> ()
    %cst_38 = arith.constant dense<0.000000e+00> : vector<2x8x8xf32>
    %108 = tpu.matmul %107, %98, %cst_38 {dimension_numbers = #tpu.dot_dimension_numbers<[2], [1], [1], [2], [0, 0, 0, 1, 1, 2], [0], [0]>} : vector<2x8x8xbf16>, vector<2x8x8xbf16>, vector<2x8x8xf32> -> vector<2x8x8xf32>
    "tpu.trace_stop"() : () -> ()
    %109 = tpu.reciprocal %106 {approx = true} : vector<2x8x1xf32> -> vector<2x8x1xf32>
    %110 = vector.broadcast %109 : vector<2x8x1xf32> to vector<2x8x8xf32>
    %111 = arith.mulf %108, %110 : vector<2x8x8xf32>
    %112 = vector.shape_cast %111 : vector<2x8x8xf32> to vector<16x8xf32>
    %113 = arith.truncf %112 : vector<16x8xf32> to vector<16x8xbf16>
    %c16 = arith.constant 16 : index
    %c0_39 = arith.constant 0 : index
    %114 = vector.load %arg8[%c16, %c0_39] : memref<32x32xbf16, #tpu.memory_space<vmem>>, vector<8x32xbf16>
    %cst_40 = arith.constant dense<0.000000e+00> : vector<16x32xf32>
    %115 = tpu.matmul %113, %114, %cst_40 {dimension_numbers = #tpu.dot_dimension_numbers<[1], [0], [0], [1], [0, 0, 1, 1], [], []>} : vector<16x8xbf16>, vector<8x32xbf16>, vector<16x32xf32> -> vector<16x32xf32>
    %116 = arith.addf %92, %115 : vector<16x32xf32>
    %117 = vector.extract_strided_slice %41 {offsets = [0, 0, 24], sizes = [2, 8, 8], strides = [1, 1, 1]} : vector<2x8x32xf32> to vector<2x8x8xf32>
    %118 = arith.truncf %117 : vector<2x8x8xf32> to vector<2x8x8xbf16>
    %119 = vector.extract_strided_slice %42 {offsets = [0, 0, 24], sizes = [2, 8, 8], strides = [1, 1, 1]} : vector<2x8x32xf32> to vector<2x8x8xf32>
    %120 = arith.truncf %119 : vector<2x8x8xf32> to vector<2x8x8xbf16>
    %121 = vector.extract_strided_slice %43 {offsets = [0, 0, 24], sizes = [2, 8, 8], strides = [1, 1, 1]} : vector<2x8x32xf32> to vector<2x8x8xf32>
    %122 = arith.truncf %121 : vector<2x8x8xf32> to vector<2x8x8xbf16>
    "tpu.trace_start"() <{level = 10 : i32, message = "bqd,bkd->bqk"}> : () -> ()
    %cst_41 = arith.constant dense<0.000000e+00> : vector<2x8x8xf32>
    %123 = tpu.matmul %118, %120, %cst_41 {dimension_numbers = #tpu.dot_dimension_numbers<[2], [2], [1], [1], [0, 0, 0, 1, 1, 1], [0], [0]>} : vector<2x8x8xbf16>, vector<2x8x8xbf16>, vector<2x8x8xf32> -> vector<2x8x8xf32>
    "tpu.trace_stop"() : () -> ()
    %cst_42 = arith.constant dense<0xFF800000> : vector<2x8xf32>
    %124 = vector.multi_reduction <maximumf>, %123, %cst_42 [2] : vector<2x8x8xf32> to vector<2x8xf32>
    %125 = vector.shape_cast %124 : vector<2x8xf32> to vector<2x8x1xf32>
    %126 = vector.broadcast %125 : vector<2x8x1xf32> to vector<2x8x8xf32>
    %127 = arith.subf %123, %126 : vector<2x8x8xf32>
    %128 = math.exp %127 : vector<2x8x8xf32>
    %cst_43 = arith.constant dense<0.000000e+00> : vector<2x8xf32>
    %129 = vector.multi_reduction <add>, %128, %cst_43 [2] : vector<2x8x8xf32> to vector<2x8xf32>
    %130 = vector.shape_cast %129 : vector<2x8xf32> to vector<2x8x1xf32>
    %131 = arith.truncf %128 : vector<2x8x8xf32> to vector<2x8x8xbf16>
    "tpu.trace_start"() <{level = 10 : i32, message = "bqk,bkd->bqd"}> : () -> ()
    %cst_44 = arith.constant dense<0.000000e+00> : vector<2x8x8xf32>
    %132 = tpu.matmul %131, %122, %cst_44 {dimension_numbers = #tpu.dot_dimension_numbers<[2], [1], [1], [2], [0, 0, 0, 1, 1, 2], [0], [0]>} : vector<2x8x8xbf16>, vector<2x8x8xbf16>, vector<2x8x8xf32> -> vector<2x8x8xf32>
    "tpu.trace_stop"() : () -> ()
    %133 = tpu.reciprocal %130 {approx = true} : vector<2x8x1xf32> -> vector<2x8x1xf32>
    %134 = vector.broadcast %133 : vector<2x8x1xf32> to vector<2x8x8xf32>
    %135 = arith.mulf %132, %134 : vector<2x8x8xf32>
    %136 = vector.shape_cast %135 : vector<2x8x8xf32> to vector<16x8xf32>
    %137 = arith.truncf %136 : vector<16x8xf32> to vector<16x8xbf16>
    %c24 = arith.constant 24 : index
    %c0_45 = arith.constant 0 : index
    %138 = vector.load %arg8[%c24, %c0_45] : memref<32x32xbf16, #tpu.memory_space<vmem>>, vector<8x32xbf16>
    %cst_46 = arith.constant dense<0.000000e+00> : vector<16x32xf32>
    %139 = tpu.matmul %137, %138, %cst_46 {dimension_numbers = #tpu.dot_dimension_numbers<[1], [0], [0], [1], [0, 0, 1, 1], [], []>} : vector<16x8xbf16>, vector<8x32xbf16>, vector<16x32xf32> -> vector<16x32xf32>
    %140 = arith.addf %116, %139 : vector<16x32xf32>
    %141 = arith.addf %1, %140 : vector<16x32xf32>
    %c0_47 = arith.constant 0 : index
    %c0_48 = arith.constant 0 : index
    %142 = vector.load %arg9[%c0_47, %c0_48] : memref<1x32xf32, #tpu.memory_space<vmem>>, vector<1x32xf32>
    %143 = vector.broadcast %142 : vector<1x32xf32> to vector<16x32xf32>
    %144 = arith.addf %141, %143 : vector<16x32xf32>
    %cst_49 = arith.constant dense<0.000000e+00> : vector<16xf32>
    %145 = vector.multi_reduction <add>, %144, %cst_49 [1] : vector<16x32xf32> to vector<16xf32>
    %146 = vector.shape_cast %145 : vector<16xf32> to vector<16x1xf32>
    %cst_50 = arith.constant 3.200000e+01 : f32
    %147 = vector.broadcast %cst_50 : f32 to vector<16x1xf32>
    %148 = arith.divf %146, %147 : vector<16x1xf32>
    %149 = vector.broadcast %148 : vector<16x1xf32> to vector<16x32xf32>
    %150 = arith.subf %144, %149 : vector<16x32xf32>
    %151 = arith.mulf %150, %150 : vector<16x32xf32>
    %cst_51 = arith.constant dense<0.000000e+00> : vector<16xf32>
    %152 = vector.multi_reduction <add>, %151, %cst_51 [1] : vector<16x32xf32> to vector<16xf32>
    %153 = vector.shape_cast %152 : vector<16xf32> to vector<16x1xf32>
    %cst_52 = arith.constant 3.200000e+01 : f32
    %154 = vector.broadcast %cst_52 : f32 to vector<16x1xf32>
    %155 = arith.divf %153, %154 : vector<16x1xf32>
    %156 = vector.broadcast %148 : vector<16x1xf32> to vector<16x32xf32>
    %157 = arith.subf %144, %156 : vector<16x32xf32>
    %cst_53 = arith.constant 9.99999974E-6 : f32
    %158 = vector.broadcast %cst_53 : f32 to vector<16x1xf32>
    %159 = arith.addf %155, %158 : vector<16x1xf32>
    %160 = math.rsqrt %159 : vector<16x1xf32>
    %161 = vector.broadcast %160 : vector<16x1xf32> to vector<16x32xf32>
    %162 = arith.mulf %157, %161 : vector<16x32xf32>
    %c0_54 = arith.constant 0 : index
    %c0_55 = arith.constant 0 : index
    %163 = vector.load %arg10[%c0_54, %c0_55] : memref<1x32xf32, #tpu.memory_space<vmem>>, vector<1x32xf32>
    %164 = vector.broadcast %163 : vector<1x32xf32> to vector<16x32xf32>
    %165 = arith.mulf %162, %164 : vector<16x32xf32>
    %c0_56 = arith.constant 0 : index
    %c0_57 = arith.constant 0 : index
    %166 = vector.load %arg11[%c0_56, %c0_57] : memref<1x32xf32, #tpu.memory_space<vmem>>, vector<1x32xf32>
    %167 = vector.broadcast %166 : vector<1x32xf32> to vector<16x32xf32>
    %168 = arith.addf %165, %167 : vector<16x32xf32>
    %169 = vector.shape_cast %168 : vector<16x32xf32> to vector<2x8x32xf32>
    %c0_58 = arith.constant 0 : index
    %c0_59 = arith.constant 0 : index
    %c0_60 = arith.constant 0 : index
    %170 = vector.load %arg12[%c0_58, %c0_59, %c0_60] : memref<2x8x32xf32, #tpu.memory_space<vmem>>, vector<2x8x32xf32>
    tpu.vector_store %arg12[%c0_58, %c0_59, %c0_60], %169 {strides = array<i32>} : memref<2x8x32xf32, #tpu.memory_space<vmem>>, vector<2x8x32xf32>,
    return
  }
  func.func @transform_0(%arg0: i32) -> (i32, i32, i32) {
    %c0_i32 = arith.constant 0 : i32
    %c0_i32_0 = arith.constant 0 : i32
    %c0_i32_1 = arith.constant 0 : i32
    return %arg0, %c0_i32, %c0_i32_0 : i32, i32, i32
  }
  func.func @transform_1(%arg0: i32) -> (i32, i32) {
    %c0_i32 = arith.constant 0 : i32
    %c0_i32_0 = arith.constant 0 : i32
    %c0_i32_1 = arith.constant 0 : i32
    return %c0_i32, %c0_i32_0 : i32, i32
  }
  func.func @transform_2(%arg0: i32) -> (i32, i32) {
    %c0_i32 = arith.constant 0 : i32
    %c0_i32_0 = arith.constant 0 : i32
    %c0_i32_1 = arith.constant 0 : i32
    return %c0_i32, %c0_i32_0 : i32, i32
  }
  func.func @transform_3(%arg0: i32) -> (i32, i32) {
    %c0_i32 = arith.constant 0 : i32
    %c0_i32_0 = arith.constant 0 : i32
    %c0_i32_1 = arith.constant 0 : i32
    return %c0_i32, %c0_i32_0 : i32, i32
  }
  func.func @transform_4(%arg0: i32) -> (i32, i32) {
    %c0_i32 = arith.constant 0 : i32
    %c0_i32_0 = arith.constant 0 : i32
    %c0_i32_1 = arith.constant 0 : i32
    return %c0_i32, %c0_i32_0 : i32, i32
  }
  func.func @transform_5(%arg0: i32) -> (i32, i32) {
    %c0_i32 = arith.constant 0 : i32
    %c0_i32_0 = arith.constant 0 : i32
    %c0_i32_1 = arith.constant 0 : i32
    return %c0_i32, %c0_i32_0 : i32, i32
  }
  func.func @transform_6(%arg0: i32) -> (i32, i32) {
    %c0_i32 = arith.constant 0 : i32
    %c0_i32_0 = arith.constant 0 : i32
    %c0_i32_1 = arith.constant 0 : i32
    return %c0_i32, %c0_i32_0 : i32, i32
  }
  func.func @transform_7(%arg0: i32) -> (i32, i32) {
    %c0_i32 = arith.constant 0 : i32
    %c0_i32_0 = arith.constant 0 : i32
    %c0_i32_1 = arith.constant 0 : i32
    return %c0_i32, %c0_i32_0 : i32, i32
  }
  func.func @transform_8(%arg0: i32) -> (i32, i32) {
    %c0_i32 = arith.constant 0 : i32
    %c0_i32_0 = arith.constant 0 : i32
    %c0_i32_1 = arith.constant 0 : i32
    return %c0_i32, %c0_i32_0 : i32, i32
  }
  func.func @transform_9(%arg0: i32) -> (i32, i32) {
    %c0_i32 = arith.constant 0 : i32
    %c0_i32_0 = arith.constant 0 : i32
    %c0_i32_1 = arith.constant 0 : i32
    return %c0_i32, %c0_i32_0 : i32, i32
  }
  func.func @transform_10(%arg0: i32) -> (i32, i32) {
    %c0_i32 = arith.constant 0 : i32
    %c0_i32_0 = arith.constant 0 : i32
    %c0_i32_1 = arith.constant 0 : i32
    return %c0_i32, %c0_i32_0 : i32, i32
  }
  func.func @transform_11(%arg0: i32) -> (i32, i32, i32) {
    %c0_i32 = arith.constant 0 : i32
    %c0_i32_0 = arith.constant 0 : i32
    %c0_i32_1 = arith.constant 0 : i32
    return %arg0, %c0_i32, %c0_i32_0 : i32, i32, i32
  }
}

</mosaic_0001>

<bundles_post_ra>
// kernel: tpu_custom_call.1
= control target key start
LH: loop header
LB: loop body
LE: loop exit
PB: predicated region body
PF: predicated region fallthrough
CT: control target
= control target key end

     0   :  { %16 = vsyncpa [#allocation3], 0  ;;  %s2155_s0 = inlined_call_operand.hbm [shape: f32[2,8,32], index: 0, kind: input, shape index: {}]   ;;  %s2156_s1 = inlined_call_operand.vmem [shape: f32[1,32], index: 1, kind: input, shape index: {}]   ;;  %s2157_s2 = inlined_call_operand.vmem [shape: f32[1,32], index: 2, kind: input, shape index: {}]   ;;  %s2158_s3 = inlined_call_operand.hbm [shape: bf16[32,32], index: 3, kind: input, shape index: {}]   ;;  %s2159_s4 = inlined_call_operand.vmem [shape: f32[1,32], index: 4, kind: input, shape index: {}]   ;;  %s2160_s5 = inlined_call_operand.hbm [shape: bf16[32,96], index: 5, kind: input, shape index: {}]   ;;  %s2161_s6 = inlined_call_operand.vmem [shape: f32[1,96], index: 6, kind: input, shape index: {}]   ;;  %s2162_s7 = inlined_call_operand.hbm [shape: bf16[32,32], index: 7, kind: input, shape index: {}]   ;;  %s2163_s8 = inlined_call_operand.vmem [shape: f32[1,32], index: 8, kind: input, shape index: {}]   ;;  %s2164_s9 = inlined_call_operand.vmem [shape: f32[1,32], index: 9, kind: input, shape index: {}]   ;;  %s2165_s10 = inlined_call_operand.vmem [shape: f32[1,32], index: 10, kind: input, shape index: {}]   ;;  %s2166_s11 = inlined_call_operand.hbm [shape: f32[2,8,32], index: 11, kind: output, shape index: {}]  }
   0x1   :  { %17 = vsyncpa [#allocation6], 0 }
   0x2   :  { %18 = vsyncpa [#allocation9], 0 }
   0x3   :  { %19 = vsyncpa [#allocation4], 0  ;;  %s1827_s17 = smov [#allocation5]  }
   0x4   :  { %s41_s18 = sshll.u32 %s1827_s17, 4  ;;  %s42_s18 = int_to_ptr.vmem [resolvable:$true] %s41_s18 }
   0x5   :  { %s1727_s19 = scalar_lea.vmem %s42_s18, 256  ;;  %p1732_p1 = scmp.lt.s32.totalorder %s42_s18, %s42_s18 }
   0x6   :  { %p1728_p0 = scmp.ne.s32.totalorder %s42_s18, %s1727_s19  ;;  %p1733_p2 = scmp.lt.s32.totalorder %s1727_s19, %s1727_s19 }
   0x8   :  { %p1734_p3 = por %p1733_p2, %p1732_p1 }
   0xa   :  { %p1735_p4 = pnand %p1734_p3, %p1728_p0 }
   0xc   :  { %1738 = shalt.err (!%p1735_p4)
}
   0xd   :  { %s1828_s20 = smov 64   ;;  %s1829_s21 = smov 4  }
   0xe   :  { %47 = dma.hbm_to_vmem [thread:$0]  %s2158_s3, 256, %s42_s18, [#allocation6], %s1828_s20, %s1828_s20, %s1829_s21  }
   0xf   :  { %s1830_s24 = smov [#allocation2]  }
  0x10   :  { %s25_s25 = sshll.u32 %s1830_s24, 4  ;;  %s26_s25 = int_to_ptr.vmem [resolvable:$true] %s25_s25 }
  0x11   :  { %s1747_s26 = scalar_lea.vmem %s26_s25, 256  ;;  %p1752_p6 = scmp.lt.s32.totalorder %s26_s25, %s26_s25 }
  0x12   :  { %p1748_p5 = scmp.ne.s32.totalorder %s26_s25, %s1747_s26  ;;  %p1753_p7 = scmp.lt.s32.totalorder %s1747_s26, %s1747_s26 }
  0x14   :  { %p1754_p8 = por %p1753_p7, %p1752_p6 }
  0x16   :  { %p1755_p9 = pnand %p1754_p8, %p1748_p5 }
  0x18   :  { %1758 = shalt.err (!%p1755_p9)
}
  0x19   :  { %s1831_s27 = smov 128   ;;  %s1832_s28 = smov 8  }
  0x1a   :  { %31 = dma.hbm_to_vmem [thread:$0]  %s2155_s0, 256, %s26_s25, [#allocation3], %s1831_s27, %s1831_s27, %s1832_s28  }
  0x1b   :  { %s1833_s3 = smov [#allocation7]   ;;  %s1834_s13 = smov [#allocation8]  }
  0x1c   :  { %s55_s12 = sshll.u32 %s1833_s3, 4  ;;  %s69_s14 = sshll.u32 %s1834_s13, 4  ;;  %s56_s12 = int_to_ptr.vmem [resolvable:$true] %s55_s12  ;;  %s70_s14 = int_to_ptr.vmem [resolvable:$true] %s69_s14 }
  0x1d   :  { %s1767_s15 = scalar_lea.vmem %s56_s12, 256  ;;  %p1772_p11 = scmp.lt.s32.totalorder %s56_s12, %s56_s12 }
  0x1e   :  { %p1768_p10 = scmp.ne.s32.totalorder %s56_s12, %s1767_s15  ;;  %p1773_p12 = scmp.lt.s32.totalorder %s1767_s15, %s1767_s15 }
  0x20   :  { %p1774_p13 = por %p1773_p12, %p1772_p11 }
  0x22   :  { %p1775_p0 = pnand %p1774_p13, %p1768_p10 }
  0x24   :  { %1778 = shalt.err (!%p1775_p0)
}
  0x25   :  { %61 = dma.hbm_to_vmem [thread:$0]  %s2160_s5, 256, %s56_s12, [#allocation6], %s1828_s20, %s1828_s20, %s1829_s21  }
  0x26   :  { %s1787_s0 = scalar_lea.vmem %s70_s14, 256  ;;  %p1792_p2 = scmp.lt.s32.totalorder %s70_s14, %s70_s14 }
  0x27   :  { %p1788_p1 = scmp.ne.s32.totalorder %s70_s14, %s1787_s0  ;;  %p1793_p3 = scmp.lt.s32.totalorder %s1787_s0, %s1787_s0 }
  0x29   :  { %p1794_p4 = por %p1793_p3, %p1792_p2 }
  0x2b   :  { %p1795_p5 = pnand %p1794_p4, %p1788_p1 }
  0x2d   :  { %1798 = shalt.err (!%p1795_p5)
}
  0x2e   :  { %75 = dma.hbm_to_vmem [thread:$0]  %s2162_s7, 256, %s70_s14, [#allocation9], %s1828_s20, %s1828_s20, %s1829_s21  }
  0x2f   :  { %1819 = dma.done.wait [#allocation3], 256  }
  0x30   :  { %1820 = vsyncadd [#allocation3], 4294967040 }
  0x31   :  { %1821 = dma.done.wait [#allocation6], 512  }
  0x32   :  { %1822 = vsyncadd [#allocation6], 4294966784 }
  0x33   :  { %1823 = dma.done.wait [#allocation9], 256  }
  0x34   :  { %1824 = vsyncadd [#allocation9], 4294967040  ;;  %vm97_vm0 = vcmask 261120   ;;  %v1932_v0 = vld [vmem:[#allocation2] sm:$0xff]  ;;  %v1934_v1 = vld [vmem:[#allocation2 + $0x8] sm:$0xff]  ;;  %v1835_v15 = vmov 0.0  }
  0x35   :  { %v98_v2 = vsel %vm97_vm0, %v1932_v0, 0.0  ;;  %v101_v3 = vsel %vm97_vm0, %v1934_v1, 0.0  ;;  %v1675_v14 = vld [vmem:[#allocation5 + $0x8] sm:$0xff]   ;;  %1518 = vmatprep.subr.bf16.mxu0 %v1835_v15  ;;  %vm1836_vm1 = vmmov 0   ;;  %v1676_v16 = vld [vmem:[#allocation5] sm:$0xff]   ;;  %1526 = vmatprep.subr.bf16.mxu1 %v1835_v15  ;;  %v1677_v34 = vld [vmem:[#allocation7 + $0x8] sm:$0xff]  }
  0x36   :  { %99 = vadd.xlane.f32.xlu0 %v98_v2  ;;  %1522 = vmatprep.mubr.msk.bf16.mxu0 %vm1836_vm1, %v1835_v15  ;;  %v1439_v25 = vld [vmem:[%s2156_s1] ss:$0 sm:$0xff]  ;;  %vm286_vm2 = vcmask 64512   ;;  %s1839_s25 = smov 120   ;;  %vm407_vm3 = vcmask 1043456   ;;  %s1841_s26 = smov 80  }
  0x37   :  { %1519 = vmatpush3.bf16.msra.mxu0 %v1675_v14  ;;  %1530 = vmatprep.mubr.msk.bf16.mxu1 %vm1836_vm1, %v1835_v15  ;;  %v1440_v29 = vld [vmem:[%s2157_s2] ss:$0 sm:$0xff]  ;;  %s1842_s29 = smov 112   ;;  %s1843_s30 = smov 48  }
  0x38   :  { %1520 = vmatprep.subr.bf16.mxu0 %v1835_v15  ;;  %1527 = vmatpush3.bf16.msra.mxu1 %v1677_v34  ;;  %v1678_v35 = vld [vmem:[#allocation7] sm:$0xff]   ;;  %s1844_s3 = smov 72   ;;  %s1845_s12 = smov 104  }
  0x39   :  { %1528 = vmatprep.subr.bf16.mxu1 %v1835_v15  ;;  %v1441_v36 = vld [vmem:[%s2159_s4] ss:$0 sm:$0xff]  ;;  %s1837_s4 = smov 96   ;;  %s1846_s13 = smov 40  }
  0x3a   :  { %102 = vadd.xlane.f32.xlu0 %v101_v3  ;;  %v1445_v46 = vld [vmem:[%s2161_s6] ss:$0 sm:$0xff]  ;;  %s1838_s6 = smov 88   ;;  %s1847_s18 = smov [#allocation10]  }
  0x3b   :  { %1521 = vmatpush3.bf16.msra.mxu0 %v1676_v16  ;;  %s1425_s19 = sshll.u32 %s1847_s18, 4  ;;  %s1426_s19 = int_to_ptr.vmem [resolvable:$true] %s1425_s19 }
  0x3c   :  { %1534 = vmatprep.subr.bf16.mxu0 %v1835_v15  ;;  %1529 = vmatpush3.bf16.msra.mxu1 %v1678_v35  ;;  %s1799_s5 = scalar_lea.vmem %s1426_s19, 256  ;;  %p1804_p7 = scmp.lt.s32.totalorder %s1426_s19, %s1426_s19 }
  0x3d   :  { %1540 = vmatprep.subr.bf16.mxu1 %v1835_v15  ;;  %p1800_p6 = scmp.ne.s32.totalorder %s1426_s19, %s1799_s5  ;;  %p1805_p8 = scmp.lt.s32.totalorder %s1799_s5, %s1799_s5 }
  0x3f   :  { %p1806_p9 = por %p1805_p8, %p1804_p7 }
  0x41   :  { %p1807_p10 = pnand %p1806_p9, %p1800_p6 }
  0xbf   :  { %v100_v4 = vpop.xlane.xlu0 %99 }
  0xc0   :  { %v105_v5 = vmul.f32 0.03125, %v100_v4 }
  0xc2   :  { %v107_v6 = vsub.f32 %v1932_v0, %v105_v5 }
  0xc3   :  { %v103_v7 = vpop.xlane.xlu0 %102 }
  0xc4   :  { %v106_v8 = vmul.f32 0.03125, %v103_v7  ;;  %v109_v9 = vmul.f32 %v107_v6, %v107_v6 }
  0xc6   :  { %v108_v10 = vsub.f32 %v1934_v1, %v106_v8  ;;  %v111_v11 = vsel %vm97_vm0, %v109_v9, 0.0 }
  0xc7   :  { %112 = vadd.xlane.f32.xlu1 %v111_v11 }
  0xc8   :  { %v110_v12 = vmul.f32 %v108_v10, %v108_v10 }
  0xca   :  { %v114_v13 = vsel %vm97_vm0, %v110_v12, 0.0 }
  0xcb   :  { %115 = vadd.xlane.f32.xlu1 %v114_v13 }
 0x150   :  { %v113_v17 = vpop.xlane.xlu1 %112 }
 0x151   :  { %v117_v18 = vmul.f32 0.03125, %v113_v17 }
 0x153   :  { %v119_v19 = vadd.f32 1e-05, %v117_v18 }
 0x154   :  { %v116_v20 = vpop.xlane.xlu1 %115 }
 0x155   :  { %1679 = vrsqrt.f32 %v119_v19  ;;  %v118_v21 = vmul.f32 0.03125, %v116_v20 }
 0x157   :  { %v120_v22 = vadd.f32 1e-05, %v118_v21 }
 0x159   :  { %1681 = vrsqrt.f32 %v120_v22 }
 0x162   :  { %v1680_v23 = vpop.eup %1679 }
 0x163   :  { %v123_v24 = vmul.f32 %v1680_v23, %v107_v6 }
 0x165   :  { %v132_v28 = vmul.f32 %v1439_v25, %v123_v24 }
 0x166   :  { %v1682_v26 = vpop.eup %1681 }
 0x167   :  { %v124_v27 = vmul.f32 %v1682_v26, %v108_v10  ;;  %v141_v31 = vadd.f32 %v1440_v29, %v132_v28 }
 0x169   :  { %v133_v30 = vmul.f32 %v1439_v25, %v124_v27 }
 0x16b   :  { %v142_v32 = vadd.f32 %v1440_v29, %v133_v30 }
 0x16d   :  { %v143_v33 = vpack.c.bf16 %v142_v32, %v141_v31 }
 0x16f   :  { %1523 = vmatmul.mubr.msk.bf16.vlgmr.msra.gmra.mxu0 %vm97_vm0, %v143_v33 }
 0x170   :  { %1536 = vmatprep.mubr.msk.bf16.mxu0 %vm1836_vm1, %v1835_v15 }
 0x22f   :  { %v204_v37 = vpop.f32.mrf.mxu0 }
 0x230   :  { %v205_v39 = vadd.f32 %v1441_v36, %v204_v37 }
 0x231   :  { %v1524_v38 = vpop.f32.mrf.mxu0 }
 0x232   :  { %v211_v43 = vmax.f32 %v205_v39, 0.0 }
 0x233   :  { %v207_v40 = vpop.f32.mrf.mxu0 }
 0x234   :  { %v208_v41 = vadd.f32 %v1441_v36, %v207_v40 }
 0x235   :  { %v1525_v42 = vpop.f32.mrf.mxu0 }
 0x236   :  { %v212_v44 = vmax.f32 %v208_v41, 0.0 }
 0x238   :  { %v213_v45 = vpack.c.bf16 %v212_v44, %v211_v43 }
 0x23a   :  { %1531 = vmatmul.mubr.msk.bf16.vlgmr.msra.gmra.mxu1 %vm97_vm0, %v213_v45 }
 0x23b   :  { %1542 = vmatprep.mubr.msk.bf16.mxu1 %vm1836_vm1, %v1835_v15 }
 0x2fa   :  { %v274_v47 = vpop.f32.mrf.mxu1 }
 0x2fb   :  { %v275_v48 = vadd.f32 %v1445_v46, %v274_v47 }
 0x2fc   :  { %v1532_v49 = vpop.f32.mrf.mxu1 }
 0x2fd   :  { %v1972_v50 = vpack.c.bf16 %v275_v48, %v275_v48 }
 0x2fe   :  { %v277_v51 = vpop.f32.mrf.mxu1 }
 0x2ff   :  { %v278_v52 = vadd.f32 %v1445_v46, %v277_v51  ;;  %284 = vrot.lane.b32.xlu0 %v1972_v50, %s1837_s4 }
 0x300   :  { %v1533_v53 = vpop.f32.mrf.mxu1 }
 0x301   :  { %v1975_v54 = vpack.c.bf16 %v278_v52, %v278_v52 }
 0x303   :  { %334 = vrot.lane.b32.xlu1 %v1975_v54, %s1837_s4 }
 0x371   :  { %v285_v55 = vpop.permute.xlu0 %284 }
 0x372   :  { %v291_v56 = vsel %vm286_vm2, %v285_v55, 0 }
 0x373   :  { %1535 = vmatpush3.bf16.xpose.msra.mxu0 %v291_v56 }
 0x374   :  { %1546 = vmatprep.subr.bf16.mxu0 %v1835_v15 }
 0x375   :  { %v335_v57 = vpop.permute.xlu1 %334 }
 0x376   :  { %v340_v58 = vsel %vm286_vm2, %v335_v57, 0 }
 0x377   :  { %1541 = vmatpush3.bf16.xpose.msra.mxu1 %v340_v58 }
 0x378   :  { %1552 = vmatprep.subr.bf16.mxu1 %v1835_v15 }
 0x37a   :  { %1537 = vmatmul.mubr.msk.bf16.vlgmr.msra.gmra.mxu0 %vm286_vm2, %v1972_v50 }
 0x37b   :  { %1548 = vmatprep.mubr.msk.bf16.mxu0 %vm1836_vm1, %v1835_v15 }
 0x37e   :  { %1543 = vmatmul.mubr.msk.bf16.vlgmr.msra.gmra.mxu1 %vm286_vm2, %v1975_v54 }
 0x37f   :  { %1554 = vmatprep.mubr.msk.bf16.mxu1 %vm1836_vm1, %v1835_v15 }
 0x43a   :  { %v327_v59 = vpop.f32.mrf.mxu0 }
 0x43b   :  { %v382_v60 = vsel %vm286_vm2, %v327_v59, -inf }
 0x43c   :  { %383 = vmax.xlane.f32.xlu1 %v382_v60  ;;  %v1538_v61 = vpop.f32.mrf.mxu0 }
 0x43e   :  { %v330_v62 = vpop.f32.mrf.mxu0  ;;  %v376_v63 = vpop.f32.mrf.mxu1 }
 0x43f   :  { %v385_v2 = vsel %vm286_vm2, %v376_v63, -inf }
 0x440   :  { %386 = vmax.xlane.f32.xlu0 %v385_v2  ;;  %v1539_v3 = vpop.f32.mrf.mxu0  ;;  %v1544_v4 = vpop.f32.mrf.mxu1 }
 0x442   :  { %v379_v5 = vpop.f32.mrf.mxu1 }
 0x444   :  { %v1545_v6 = vpop.f32.mrf.mxu1 }
 0x44d   :  { %451 = vrot.lane.b32.xlu1 %v1975_v54, %s1828_s20 }
 0x451   :  { %507 = vrot.lane.b32.xlu1 %v1972_v50, %s1838_s6 }
 0x455   :  { %557 = vrot.lane.b32.xlu1 %v1975_v54, %s1838_s6 }
 0x456   :  { %402 = vrot.lane.b32.xlu0 %v1972_v50, %s1828_s20  ;;  %s1840_s20 = smov 56  }
 0x459   :  { %555 = vrot.lane.b32.xlu1 %v1975_v54, %s1839_s25 }
 0x45a   :  { %505 = vrot.lane.b32.xlu0 %v1972_v50, %s1839_s25 }
 0x4c5   :  { %v384_v7 = vpop.xlane.xlu1 %383 }
 0x4c6   :  { %v388_v8 = vsub.f32 %v327_v59, %v384_v7 }
 0x4c8   :  { %v390_v9 = vmul.f32 1.442695, %v388_v8 }
 0x4c9   :  { %v387_v10 = vpop.xlane.xlu0 %386  ;;  %v452_v11 = vpop.permute.xlu1 %451 }
 0x4ca   :  { %1683 = vpow2.f32 %v390_v9  ;;  %v389_v12 = vsub.f32 %v376_v63, %v387_v10  ;;  %v457_v13 = vsel %vm407_vm3, %v452_v11, 0  ;;  %v504_v63 = vld [vmem:[#allocation8] sm:$0xf] }
 0x4cb   :  { %1553 = vmatpush3.bf16.msra.mxu1 %v457_v13  ;;  %v778_v5 = vsel %vm407_vm3, %v504_v63, 0 }
 0x4cc   :  { %v392_v14 = vmul.f32 1.442695, %v389_v12  ;;  %1564 = vmatprep.subr.bf16.mxu1 %v1835_v15 }
 0x4cd   :  { %v403_v16 = vpop.permute.xlu0 %402  ;;  %v508_v18 = vpop.permute.xlu1 %507 }
 0x4ce   :  { %1685 = vpow2.f32 %v392_v14  ;;  %v409_v17 = vsel %vm407_vm3, %v403_v16, 0  ;;  %v513_v21 = vsel %vm286_vm2, %v508_v18, 0  ;;  %v726_v18 = vld [vmem:[#allocation8 + $0x4] sm:$0xf] }
 0x4cf   :  { %1547 = vmatpush3.bf16.msra.mxu0 %v409_v17 }
 0x4d0   :  { %1558 = vmatprep.subr.bf16.mxu0 %v1835_v15 }
 0x4d1   :  { %v558_v23 = vpop.permute.xlu1 %557  ;;  %v506_v26 = vpop.permute.xlu0 %505 }
 0x4d2   :  { %v563_v25 = vsel %vm286_vm2, %v558_v23, 0 }
 0x4d5   :  { %v556_v27 = vpop.permute.xlu1 %555 }
 0x4d7   :  { %v1684_v19 = vpop.eup %1683 }
 0x4d8   :  { %v400_v20 = vpack.c.bf16 %v1684_v19, %v1684_v19  ;;  %v394_v46 = vsel %vm286_vm2, %v1684_v19, 0.0  ;;  %v731_v19 = vsel %vm407_vm3, %v726_v18, 0 }
 0x4da   :  { %1549 = vmatmul.mubr.msk.bf16.vlgmr.msra.gmra.mxu0 %vm286_vm2, %v400_v20 }
 0x4db   :  { %v1686_v22 = vpop.eup %1685  ;;  %1559 = vmatpush3.bf16.xpose.msra.mxu0 %v513_v21  ;;  %1560 = vmatprep.mubr.msk.bf16.mxu0 %vm1836_vm1, %v1835_v15 }
 0x4dc   :  { %v401_v24 = vpack.c.bf16 %v1686_v22, %v1686_v22  ;;  %1570 = vmatprep.subr.bf16.mxu0 %v1835_v15  ;;  %v397_v47 = vsel %vm286_vm2, %v1686_v22, 0.0 }
 0x4de   :  { %1555 = vmatmul.mubr.msk.bf16.vlgmr.msra.gmra.mxu1 %vm286_vm2, %v401_v24 }
 0x4df   :  { %1565 = vmatpush3.bf16.xpose.msra.mxu1 %v563_v25  ;;  %1566 = vmatprep.mubr.msk.bf16.mxu1 %vm1836_vm1, %v1835_v15 }
 0x4e0   :  { %1576 = vmatprep.subr.bf16.mxu1 %v1835_v15 }
 0x4e2   :  { %1561 = vmatmul.mubr.msk.bf16.vlgmr.msra.gmra.mxu0 %vm286_vm2, %v506_v26 }
 0x4e3   :  { %1572 = vmatprep.mubr.msk.bf16.mxu0 %vm1836_vm1, %v1835_v15 }
 0x4e6   :  { %1567 = vmatmul.mubr.msk.bf16.vlgmr.msra.gmra.mxu1 %vm286_vm2, %v556_v27 }
 0x4e7   :  { %1578 = vmatprep.mubr.msk.bf16.mxu1 %vm1836_vm1, %v1835_v15 }
 0x59a   :  { %v2020_v28 = vpop.f32.mrf.mxu0 }
 0x59c   :  { %v1550_v29 = vpop.f32.mrf.mxu0 }
 0x59e   :  { %v448_v30 = vpop.f32.mrf.mxu0  ;;  %v2022_v31 = vpop.f32.mrf.mxu1 }
 0x5a0   :  { %v1551_v32 = vpop.f32.mrf.mxu0  ;;  %v1556_v33 = vpop.f32.mrf.mxu1 }
 0x5a2   :  { %v496_v34 = vpop.f32.mrf.mxu1  ;;  %v549_v35 = vpop.f32.mrf.mxu0 }
 0x5a3   :  { %v605_v36 = vsel %vm286_vm2, %v549_v35, -inf }
 0x5a4   :  { %v1557_v37 = vpop.f32.mrf.mxu1  ;;  %606 = vmax.xlane.f32.xlu0 %v605_v36  ;;  %v1562_v38 = vpop.f32.mrf.mxu0 }
 0x5a6   :  { %v552_v39 = vpop.f32.mrf.mxu0  ;;  %v599_v40 = vpop.f32.mrf.mxu1 }
 0x5a7   :  { %v608_v41 = vsel %vm286_vm2, %v599_v40, -inf }
 0x5a8   :  { %609 = vmax.xlane.f32.xlu1 %v608_v41  ;;  %v1563_v42 = vpop.f32.mrf.mxu0  ;;  %v1568_v43 = vpop.f32.mrf.mxu1 }
 0x5aa   :  { %v602_v44 = vpop.f32.mrf.mxu1 }
 0x5ac   :  { %v1569_v45 = vpop.f32.mrf.mxu1 }
 0x5b9   :  { %673 = vrot.lane.b32.xlu1 %v1975_v54, %s1840_s20 }
 0x5ba   :  { %625 = vrot.lane.b32.xlu0 %v1972_v50, %s1840_s20 }
 0x5d9   :  { %395 = vadd.xlane.f32.xlu0 %v394_v46 }
 0x5dd   :  { %398 = vadd.xlane.f32.xlu1 %v397_v47 }
 0x5ee   :  { %873 = vrot.lane.b32.xlu1 %v1975_v54, %s1841_s26 }
 0x5f2   :  { %821 = vrot.lane.b32.xlu1 %v1972_v50, %s1842_s29 }
 0x5f6   :  { %871 = vrot.lane.b32.xlu1 %v1975_v54, %s1842_s29 }
 0x62d   :  { %v607_v48 = vpop.xlane.xlu0 %606 }
 0x62e   :  { %v611_v49 = vsub.f32 %v549_v35, %v607_v48 }
 0x630   :  { %v613_v51 = vmul.f32 1.442695, %v611_v49 }
 0x631   :  { %v610_v52 = vpop.xlane.xlu1 %609  ;;  %v626_v53 = vpop.permute.xlu0 %625 }
 0x632   :  { %1687 = vpow2.f32 %v613_v51  ;;  %v612_v55 = vsub.f32 %v599_v40, %v610_v52  ;;  %v631_v56 = vsel %vm407_vm3, %v626_v53, 0 }
 0x633   :  { %1571 = vmatpush3.bf16.msra.mxu0 %v631_v56 }
 0x634   :  { %v615_v57 = vmul.f32 1.442695, %v612_v55  ;;  %1582 = vmatprep.subr.bf16.mxu0 %v1835_v15 }
 0x635   :  { %v674_v58 = vpop.permute.xlu1 %673 }
 0x636   :  { %1689 = vpow2.f32 %v615_v57  ;;  %v679_v59 = vsel %vm407_vm3, %v674_v58, 0 }
 0x637   :  { %1577 = vmatpush3.bf16.msra.mxu1 %v679_v59 }
 0x638   :  { %1588 = vmatprep.subr.bf16.mxu1 %v1835_v15 }
 0x63f   :  { %v1688_v60 = vpop.eup %1687 }
 0x640   :  { %v617_v61 = vsel %vm286_vm2, %v1688_v60, 0.0  ;;  %v623_v62 = vpack.c.bf16 %v1688_v60, %v1688_v60 }
 0x641   :  { %618 = vadd.xlane.f32.xlu0 %v617_v61 }
 0x642   :  { %1573 = vmatmul.mubr.msk.bf16.vlgmr.msra.gmra.mxu0 %vm286_vm2, %v623_v62 }
 0x643   :  { %v1690_v2 = vpop.eup %1689  ;;  %1584 = vmatprep.mubr.msk.bf16.mxu0 %vm1836_vm1, %v1835_v15  ;;  %1583 = vmatpush3.bf16.msra.mxu0 %v731_v19 }
 0x644   :  { %v620_v3 = vsel %vm286_vm2, %v1690_v2, 0.0  ;;  %v624_v4 = vpack.c.bf16 %v1690_v2, %v1690_v2  ;;  %1594 = vmatprep.subr.bf16.mxu0 %v1835_v15 }
 0x645   :  { %621 = vadd.xlane.f32.xlu0 %v620_v3 }
 0x646   :  { %1579 = vmatmul.mubr.msk.bf16.vlgmr.msra.gmra.mxu1 %vm286_vm2, %v624_v4 }
 0x647   :  { %1589 = vmatpush3.bf16.msra.mxu1 %v778_v5  ;;  %1590 = vmatprep.mubr.msk.bf16.mxu1 %vm1836_vm1, %v1835_v15 }
 0x648   :  { %1600 = vmatprep.subr.bf16.mxu1 %v1835_v15 }
 0x65b   :  { %823 = vrot.lane.b32.xlu0 %v1972_v50, %s1841_s26 }
 0x662   :  { %v396_v6 = vpop.xlane.xlu0 %395 }
 0x663   :  { %1691 = vrcp.f32 %v396_v6 }
 0x666   :  { %v399_v7 = vpop.xlane.xlu1 %398 }
 0x667   :  { %1693 = vrcp.f32 %v399_v7 }
 0x66a   :  { %v874_v10 = vpop.permute.xlu1 %873 }
 0x66b   :  { %v879_v14 = vsel %vm286_vm2, %v874_v10, 0 }
 0x66e   :  { %v822_v16 = vpop.permute.xlu1 %821 }
 0x670   :  { %v1692_v8 = vpop.eup %1691 }
 0x671   :  { %v501_v11 = vmul.f32 %v1692_v8, %v2020_v28 }
 0x672   :  { %v872_v17 = vpop.permute.xlu1 %871 }
 0x674   :  { %v1694_v9 = vpop.eup %1693 }
 0x675   :  { %v502_v12 = vmul.f32 %v1694_v9, %v2022_v31 }
 0x677   :  { %v503_v13 = vpack.c.bf16 %v502_v12, %v501_v11  ;;  %v1042_v11 = vld [vmem:[#allocation8 + $0x8] sm:$0xf] }
 0x678   :  { %v1047_v12 = vsel %vm407_vm3, %v1042_v11, 0 }
 0x679   :  { %1591 = vmatmul.mubr.msk.bf16.vlgmr.msra.gmra.mxu1 %vm286_vm2, %v503_v13 }
 0x67a   :  { %1601 = vmatpush3.bf16.xpose.msra.mxu1 %v879_v14  ;;  %1602 = vmatprep.mubr.msk.bf16.mxu1 %vm1836_vm1, %v1835_v15 }
 0x67b   :  { %1612 = vmatprep.subr.bf16.mxu1 %v1835_v15 }
 0x681   :  { %1603 = vmatmul.mubr.msk.bf16.vlgmr.msra.gmra.mxu1 %vm286_vm2, %v872_v17 }
 0x682   :  { %1614 = vmatprep.mubr.msk.bf16.mxu1 %vm1836_vm1, %v1835_v15 }
 0x6ca   :  { %v619_v20 = vpop.xlane.xlu0 %618 }
 0x6cb   :  { %1695 = vrcp.f32 %v619_v20 }
 0x6ce   :  { %v622_v21 = vpop.xlane.xlu0 %621 }
 0x6cf   :  { %1697 = vrcp.f32 %v622_v21 }
 0x6d2   :  { %v824_v28 = vpop.permute.xlu0 %823 }
 0x6d3   :  { %v829_v35 = vsel %vm286_vm2, %v824_v28, 0 }
 0x6d8   :  { %v1696_v24 = vpop.eup %1695 }
 0x6dc   :  { %v1698_v25 = vpop.eup %1697 }
 0x702   :  { %v667_v22 = vpop.f32.mrf.mxu0 }
 0x703   :  { %v723_v29 = vmul.f32 %v1696_v24, %v667_v22 }
 0x704   :  { %v1574_v23 = vpop.f32.mrf.mxu0 }
 0x706   :  { %v670_v26 = vpop.f32.mrf.mxu0  ;;  %v715_v27 = vpop.f32.mrf.mxu1 }
 0x707   :  { %v724_v30 = vmul.f32 %v1698_v25, %v715_v27 }
 0x708   :  { %v1575_v31 = vpop.f32.mrf.mxu0  ;;  %v1580_v32 = vpop.f32.mrf.mxu1 }
 0x709   :  { %v725_v33 = vpack.c.bf16 %v724_v30, %v723_v29 }
 0x70a   :  { %v718_v34 = vpop.f32.mrf.mxu1 }
 0x70b   :  { %1585 = vmatmul.mubr.msk.bf16.vlgmr.msra.gmra.mxu0 %vm286_vm2, %v725_v33 }
 0x70c   :  { %1595 = vmatpush3.bf16.xpose.msra.mxu0 %v829_v35  ;;  %v1581_v36 = vpop.f32.mrf.mxu1  ;;  %1596 = vmatprep.mubr.msk.bf16.mxu0 %vm1836_vm1, %v1835_v15 }
 0x70d   :  { %1606 = vmatprep.subr.bf16.mxu0 %v1835_v15 }
 0x713   :  { %1597 = vmatmul.mubr.msk.bf16.vlgmr.msra.gmra.mxu0 %vm286_vm2, %v822_v16 }
 0x714   :  { %1608 = vmatprep.mubr.msk.bf16.mxu0 %vm1836_vm1, %v1835_v15 }
 0x739   :  { %v2070_v37 = vpop.f32.mrf.mxu1 }
 0x73b   :  { %v1592_v38 = vpop.f32.mrf.mxu1 }
 0x73d   :  { %v2072_v39 = vpop.f32.mrf.mxu1 }
 0x73f   :  { %v1593_v40 = vpop.f32.mrf.mxu1 }
 0x741   :  { %v915_v41 = vpop.f32.mrf.mxu1 }
 0x742   :  { %v924_v42 = vsel %vm286_vm2, %v915_v41, -inf }
 0x743   :  { %925 = vmax.xlane.f32.xlu1 %v924_v42  ;;  %v1604_v43 = vpop.f32.mrf.mxu1 }
 0x745   :  { %v918_v44 = vpop.f32.mrf.mxu1 }
 0x747   :  { %v1605_v45 = vpop.f32.mrf.mxu1 }
 0x754   :  { %989 = vrot.lane.b32.xlu1 %v1975_v54, %s1843_s30 }
 0x7cb   :  { %v2076_v46 = vpop.f32.mrf.mxu0 }
 0x7cc   :  { %v926_v47 = vpop.xlane.xlu1 %925  ;;  %v815_v42 = vadd.f32 %v2070_v37, %v2076_v46 }
 0x7cd   :  { %v928_v48 = vsub.f32 %v915_v41, %v926_v47  ;;  %v1586_v49 = vpop.f32.mrf.mxu0 }
 0x7cf   :  { %v931_v51 = vmul.f32 1.442695, %v928_v48  ;;  %v2078_v52 = vpop.f32.mrf.mxu0 }
 0x7d0   :  { %v990_v53 = vpop.permute.xlu1 %989  ;;  %v818_v47 = vadd.f32 %v2072_v39, %v2078_v52 }
 0x7d1   :  { %1699 = vpow2.f32 %v931_v51  ;;  %v995_v55 = vsel %vm407_vm3, %v990_v53, 0  ;;  %v1587_v56 = vpop.f32.mrf.mxu0 }
 0x7d2   :  { %1613 = vmatpush3.bf16.msra.mxu1 %v995_v55 }
 0x7d3   :  { %v865_v57 = vpop.f32.mrf.mxu0  ;;  %1624 = vmatprep.subr.bf16.mxu1 %v1835_v15 }
 0x7d4   :  { %v921_v58 = vsel %vm286_vm2, %v865_v57, -inf }
 0x7d5   :  { %922 = vmax.xlane.f32.xlu0 %v921_v58  ;;  %v1598_v59 = vpop.f32.mrf.mxu0 }
 0x7d7   :  { %v868_v60 = vpop.f32.mrf.mxu0 }
 0x7d9   :  { %v1599_v61 = vpop.f32.mrf.mxu0 }
 0x7de   :  { %v1700_v62 = vpop.eup %1699 }
 0x7df   :  { %v936_v63 = vsel %vm286_vm2, %v1700_v62, 0.0  ;;  %v940_v2 = vpack.c.bf16 %v1700_v62, %v1700_v62 }
 0x7e0   :  { %937 = vadd.xlane.f32.xlu1 %v936_v63 }
 0x7e1   :  { %1615 = vmatmul.mubr.msk.bf16.vlgmr.msra.gmra.mxu1 %vm286_vm2, %v940_v2 }
 0x7e2   :  { %1626 = vmatprep.mubr.msk.bf16.mxu1 %vm1836_vm1, %v1835_v15 }
 0x7eb   :  { %941 = vrot.lane.b32.xlu0 %v1972_v50, %s1843_s30 }
 0x7f1   :  { %1144 = vrot.lane.b32.xlu1 %v1975_v54, %s1844_s3 }
 0x7f5   :  { %1142 = vrot.lane.b32.xlu1 %v1975_v54, %s1845_s12 }
 0x85e   :  { %v923_v3 = vpop.xlane.xlu0 %922 }
 0x85f   :  { %v927_v4 = vsub.f32 %v865_v57, %v923_v3 }
 0x861   :  { %v929_v5 = vmul.f32 1.442695, %v927_v4 }
 0x862   :  { %v942_v6 = vpop.permute.xlu0 %941 }
 0x863   :  { %1701 = vpow2.f32 %v929_v5  ;;  %v947_v7 = vsel %vm407_vm3, %v942_v6, 0 }
 0x864   :  { %1607 = vmatpush3.bf16.msra.mxu0 %v947_v7  ;;  %v1313_v7 = vld [vmem:[#allocation8 + $0xc] sm:$0xf] }
 0x865   :  { %1618 = vmatprep.subr.bf16.mxu0 %v1835_v15 }
 0x869   :  { %v938_v22 = vpop.xlane.xlu1 %937 }
 0x86a   :  { %1703 = vrcp.f32 %v938_v22 }
 0x86d   :  { %v1145_v28 = vpop.permute.xlu1 %1144 }
 0x86e   :  { %v1150_v32 = vsel %vm286_vm2, %v1145_v28, 0 }
 0x870   :  { %v1702_v8 = vpop.eup %1701 }
 0x871   :  { %v933_v9 = vsel %vm286_vm2, %v1702_v8, 0.0  ;;  %v939_v10 = vpack.c.bf16 %v1702_v8, %v1702_v8  ;;  %v1143_v34 = vpop.permute.xlu1 %1142  ;;  %v1318_v8 = vsel %vm407_vm3, %v1313_v7, 0 }
 0x872   :  { %934 = vadd.xlane.f32.xlu0 %v933_v9 }
 0x873   :  { %1609 = vmatmul.mubr.msk.bf16.vlgmr.msra.gmra.mxu0 %vm286_vm2, %v939_v10 }
 0x874   :  { %1620 = vmatprep.mubr.msk.bf16.mxu0 %vm1836_vm1, %v1835_v15  ;;  %1619 = vmatpush3.bf16.msra.mxu0 %v1047_v12 }
 0x875   :  { %1630 = vmatprep.subr.bf16.mxu0 %v1835_v15 }
 0x877   :  { %v1704_v23 = vpop.eup %1703 }
 0x888   :  { %1094 = vrot.lane.b32.xlu0 %v1972_v50, %s1844_s3 }
 0x88c   :  { %1092 = vrot.lane.b32.xlu0 %v1972_v50, %s1845_s12 }
 0x8a1   :  { %v1031_v13 = vpop.f32.mrf.mxu1 }
 0x8a2   :  { %v1040_v26 = vmul.f32 %v1704_v23, %v1031_v13 }
 0x8a3   :  { %v1616_v14 = vpop.f32.mrf.mxu1 }
 0x8a5   :  { %v1034_v16 = vpop.f32.mrf.mxu1 }
 0x8a7   :  { %v1617_v17 = vpop.f32.mrf.mxu1 }
 0x8fb   :  { %v935_v18 = vpop.xlane.xlu0 %934 }
 0x8fc   :  { %1705 = vrcp.f32 %v935_v18 }
 0x8ff   :  { %v1095_v19 = vpop.permute.xlu0 %1094 }
 0x900   :  { %v1100_v20 = vsel %vm286_vm2, %v1095_v19, 0 }
 0x901   :  { %1625 = vmatpush3.bf16.xpose.msra.mxu1 %v1100_v20 }
 0x902   :  { %1636 = vmatprep.subr.bf16.mxu1 %v1835_v15 }
 0x903   :  { %v1093_v21 = vpop.permute.xlu0 %1092 }
 0x908   :  { %1627 = vmatmul.mubr.msk.bf16.vlgmr.msra.gmra.mxu1 %vm286_vm2, %v1093_v21 }
 0x909   :  { %1638 = vmatprep.mubr.msk.bf16.mxu1 %vm1836_vm1, %v1835_v15  ;;  %v1706_v24 = vpop.eup %1705 }
 0x933   :  { %v983_v25 = vpop.f32.mrf.mxu0 }
 0x934   :  { %v1039_v27 = vmul.f32 %v1706_v24, %v983_v25 }
 0x935   :  { %v1610_v29 = vpop.f32.mrf.mxu0 }
 0x936   :  { %v1041_v30 = vpack.c.bf16 %v1040_v26, %v1039_v27  ;;  %v1469_v27 = vld [vmem:[%s2163_s8] ss:$0 sm:$0xff] }
 0x937   :  { %v986_v31 = vpop.f32.mrf.mxu0 }
 0x938   :  { %1621 = vmatmul.mubr.msk.bf16.vlgmr.msra.gmra.mxu0 %vm286_vm2, %v1041_v30 }
 0x939   :  { %1631 = vmatpush3.bf16.xpose.msra.mxu0 %v1150_v32  ;;  %v1611_v33 = vpop.f32.mrf.mxu0  ;;  %1632 = vmatprep.mubr.msk.bf16.mxu0 %vm1836_vm1, %v1835_v15 }
 0x93a   :  { %1642 = vmatprep.subr.bf16.mxu0 %v1835_v15 }
 0x940   :  { %1633 = vmatmul.mubr.msk.bf16.vlgmr.msra.gmra.mxu0 %vm286_vm2, %v1143_v34 }
 0x941   :  { %1644 = vmatprep.mubr.msk.bf16.mxu0 %vm1836_vm1, %v1835_v15 }
 0x9c8   :  { %v1136_v35 = vpop.f32.mrf.mxu1 }
 0x9c9   :  { %v1192_v36 = vsel %vm286_vm2, %v1136_v35, -inf }
 0x9ca   :  { %1193 = vmax.xlane.f32.xlu0 %v1192_v36  ;;  %v1628_v38 = vpop.f32.mrf.mxu1 }
 0x9cc   :  { %v1139_v40 = vpop.f32.mrf.mxu1 }
 0x9ce   :  { %v1629_v41 = vpop.f32.mrf.mxu1 }
 0x9e0   :  { %1212 = vrot.lane.b32.xlu0 %v1972_v50, %s1846_s13 }
 0x9f8   :  { %v1083_v43 = vpop.f32.mrf.mxu0 }
 0x9f9   :  { %v1090_v44 = vadd.f32 %v1083_v43, %v815_v42 }
 0x9fa   :  { %v1622_v45 = vpop.f32.mrf.mxu0 }
 0x9fc   :  { %v1086_v48 = vpop.f32.mrf.mxu0 }
 0x9fd   :  { %v1091_v49 = vadd.f32 %v1086_v48, %v818_v47 }
 0x9fe   :  { %v1623_v51 = vpop.f32.mrf.mxu0 }
 0xa00   :  { %v1186_v53 = vpop.f32.mrf.mxu0 }
 0xa01   :  { %v1195_v55 = vsel %vm286_vm2, %v1186_v53, -inf }
 0xa02   :  { %1196 = vmax.xlane.f32.xlu1 %v1195_v55  ;;  %v1634_v56 = vpop.f32.mrf.mxu0 }
 0xa04   :  { %v1189_v57 = vpop.f32.mrf.mxu0 }
 0xa06   :  { %v1635_v58 = vpop.f32.mrf.mxu0 }
 0xa07   :  { %v1470_v58 = vld [vmem:[%s2164_s9] ss:$0 sm:$0xff] }
 0xa13   :  { %1260 = vrot.lane.b32.xlu1 %v1975_v54, %s1846_s13 }
 0xa53   :  { %v1194_v50 = vpop.xlane.xlu0 %1193 }
 0xa54   :  { %v1198_v37 = vsub.f32 %v1136_v35, %v1194_v50 }
 0xa56   :  { %v1200_v46 = vmul.f32 1.442695, %v1198_v37  ;;  %v1471_v37 = vld [vmem:[%s2165_s10] ss:$0 sm:$0xff] }
 0xa57   :  { %v1213_v59 = vpop.permute.xlu0 %1212 }
 0xa58   :  { %1707 = vpow2.f32 %v1200_v46  ;;  %v1218_v60 = vsel %vm407_vm3, %v1213_v59, 0 }
 0xa59   :  { %1637 = vmatpush3.bf16.msra.mxu1 %v1218_v60 }
 0xa5a   :  { %1648 = vmatprep.subr.bf16.mxu1 %v1835_v15 }
 0xa65   :  { %v1708_v39 = vpop.eup %1707 }
 0xa66   :  { %v1204_v52 = vsel %vm286_vm2, %v1708_v39, 0.0  ;;  %v1210_v61 = vpack.c.bf16 %v1708_v39, %v1708_v39 }
 0xa67   :  { %1205 = vadd.xlane.f32.xlu0 %v1204_v52 }
 0xa68   :  { %1639 = vmatmul.mubr.msk.bf16.vlgmr.msra.gmra.mxu1 %vm286_vm2, %v1210_v61 }
 0xa69   :  { %1650 = vmatprep.mubr.msk.bf16.mxu1 %vm1836_vm1, %v1835_v15  ;;  %1649 = vmatpush3.bf16.msra.mxu1 %v1318_v8 }
 0xa8b   :  { %v1197_v54 = vpop.xlane.xlu1 %1196 }
 0xa8c   :  { %v1199_v62 = vsub.f32 %v1186_v53, %v1197_v54 }
 0xa8e   :  { %v1202_v63 = vmul.f32 1.442695, %v1199_v62 }
 0xa8f   :  { %v1261_v2 = vpop.permute.xlu1 %1260 }
 0xa90   :  { %1709 = vpow2.f32 %v1202_v63  ;;  %v1266_v3 = vsel %vm407_vm3, %v1261_v2, 0 }
 0xa91   :  { %1643 = vmatpush3.bf16.msra.mxu0 %v1266_v3 }
 0xa9d   :  { %v1710_v4 = vpop.eup %1709 }
 0xa9e   :  { %v1207_v5 = vsel %vm286_vm2, %v1710_v4, 0.0  ;;  %v1211_v6 = vpack.c.bf16 %v1710_v4, %v1710_v4 }
 0xa9f   :  { %1208 = vadd.xlane.f32.xlu1 %v1207_v5 }
 0xaa0   :  { %1645 = vmatmul.mubr.msk.bf16.vlgmr.msra.gmra.mxu0 %vm286_vm2, %v1211_v6 }
 0xaf0   :  { %v1206_v12 = vpop.xlane.xlu0 %1205 }
 0xaf1   :  { %1711 = vrcp.f32 %v1206_v12 }
 0xafe   :  { %v1712_v14 = vpop.eup %1711 }
 0xb28   :  { %v1254_v15 = vpop.f32.mrf.mxu1  ;;  %v1209_v13 = vpop.xlane.xlu1 %1208 }
 0xb29   :  { %1713 = vrcp.f32 %v1209_v13  ;;  %v1310_v18 = vmul.f32 %v1712_v14, %v1254_v15 }
 0xb2a   :  { %v1640_v9 = vpop.f32.mrf.mxu1 }
 0xb2c   :  { %v1257_v10 = vpop.f32.mrf.mxu1 }
 0xb2e   :  { %v1641_v11 = vpop.f32.mrf.mxu1 }
 0xb36   :  { %v1714_v16 = vpop.eup %1713 }
 0xb60   :  { %v1302_v17 = vpop.f32.mrf.mxu0 }
 0xb61   :  { %v1311_v19 = vmul.f32 %v1714_v16, %v1302_v17 }
 0xb62   :  { %v1646_v20 = vpop.f32.mrf.mxu0 }
 0xb63   :  { %v1312_v21 = vpack.c.bf16 %v1311_v19, %v1310_v18 }
 0xb64   :  { %v1305_v22 = vpop.f32.mrf.mxu0 }
 0xb65   :  { %1651 = vmatmul.mubr.msk.bf16.vlgmr.msra.gmra.mxu1 %vm286_vm2, %v1312_v21 }
 0xb66   :  { %v1647_v23 = vpop.f32.mrf.mxu0 }
 0xc25   :  { %v1354_v24 = vpop.f32.mrf.mxu1 }
 0xc26   :  { %v1361_v25 = vadd.f32 %v1354_v24, %v1090_v44 }
 0xc27   :  { %v1652_v26 = vpop.f32.mrf.mxu1 }
 0xc28   :  { %v1363_v28 = vadd.f32 %v1361_v25, %v1932_v0 }
 0xc29   :  { %v1357_v29 = vpop.f32.mrf.mxu1 }
 0xc2a   :  { %v1362_v30 = vadd.f32 %v1357_v29, %v1091_v49  ;;  %v1372_v31 = vadd.f32 %v1469_v27, %v1363_v28 }
 0xc2b   :  { %v1653_v32 = vpop.f32.mrf.mxu1 }
 0xc2c   :  { %v1364_v33 = vadd.f32 %v1362_v30, %v1934_v1  ;;  %v1374_v34 = vsel %vm97_vm0, %v1372_v31, 0.0 }
 0xc2d   :  { %1375 = vadd.xlane.f32.xlu0 %v1374_v34 }
 0xc2e   :  { %v1373_v35 = vadd.f32 %v1469_v27, %v1364_v33 }
 0xc30   :  { %v1377_v36 = vsel %vm97_vm0, %v1373_v35, 0.0 }
 0xc31   :  { %1378 = vadd.xlane.f32.xlu0 %v1377_v36 }
 0xcb6   :  { %v1376_v38 = vpop.xlane.xlu0 %1375 }
 0xcb7   :  { %v1380_v40 = vmul.f32 0.03125, %v1376_v38 }
 0xcb9   :  { %v1382_v41 = vsub.f32 %v1372_v31, %v1380_v40 }
 0xcba   :  { %v1379_v42 = vpop.xlane.xlu0 %1378 }
 0xcbb   :  { %v1381_v43 = vmul.f32 0.03125, %v1379_v42  ;;  %v1384_v44 = vmul.f32 %v1382_v41, %v1382_v41 }
 0xcbd   :  { %v1383_v0 = vsub.f32 %v1373_v35, %v1381_v43  ;;  %v1386_v45 = vsel %vm97_vm0, %v1384_v44, 0.0 }
 0xcbe   :  { %1387 = vadd.xlane.f32.xlu0 %v1386_v45 }
 0xcbf   :  { %v1385_v47 = vmul.f32 %v1383_v0, %v1383_v0 }
 0xcc1   :  { %v1389_v1 = vsel %vm97_vm0, %v1385_v47, 0.0 }
 0xcc2   :  { %1390 = vadd.xlane.f32.xlu1 %v1389_v1 }
 0xd47   :  { %v1388_v48 = vpop.xlane.xlu0 %1387 }
 0xd48   :  { %v1392_v49 = vmul.f32 0.03125, %v1388_v48 }
 0xd4a   :  { %v1394_v51 = vadd.f32 1e-05, %v1392_v49 }
 0xd4b   :  { %v1391_v53 = vpop.xlane.xlu1 %1390 }
 0xd4c   :  { %1715 = vrsqrt.f32 %v1394_v51  ;;  %v1393_v55 = vmul.f32 0.03125, %v1391_v53 }
 0xd4e   :  { %v1395_v56 = vadd.f32 1e-05, %v1393_v55 }
 0xd50   :  { %1717 = vrsqrt.f32 %v1395_v56 }
 0xd59   :  { %v1716_v57 = vpop.eup %1715 }
 0xd5a   :  { %v1398_v50 = vmul.f32 %v1716_v57, %v1382_v41 }
 0xd5c   :  { %v1407_v46 = vmul.f32 %v1470_v58, %v1398_v50 }
 0xd5d   :  { %v1718_v59 = vpop.eup %1717 }
 0xd5e   :  { %v1399_v60 = vmul.f32 %v1718_v59, %v1383_v0  ;;  %v1416_v39 = vadd.f32 %v1471_v37, %v1407_v46 }
 0xd60   :  { %v1408_v52 = vmul.f32 %v1470_v58, %v1399_v60  ;;  %1418 = vst.msk [vmem:[#allocation10] sm:$0xff] %vm97_vm0, %v1416_v39 }
 0xd62   :  { %v1417_v61 = vadd.f32 %v1471_v37, %v1408_v52 }
 0xd64   :  { %1419 = vst.msk [vmem:[#allocation10 + $0x8] sm:$0xff] %vm97_vm0, %v1417_v61 }
 0xd65   :  { %1810 = shalt.err (!%p1807_p10)
}
 0xd66   :  { %1431 = dma.vmem_to_hbm [thread:$0]  %s1426_s19, 256, %s2166_s11, [#allocation4], %s1831_s27, %s1831_s27, %s1832_s28  }
 0xd67   :  { %1825 = dma.done.wait [#allocation4], 256  }
 0xd68   :  { %1826 = vsyncadd [#allocation4], 4294967040 }
 0xd69   :  { %1435 = vsyncpa [#allocation3], 1 }
 0xd6a   :  { %1436 = vsyncpa [#allocation6], 1 }
 0xd6b   :  { %1437 = vsyncpa [#allocation9], 1 }
 0xd6c   :  { %1438 = vsyncpa [#allocation4], 1 }

</bundles_post_ra>
